<compile_context>
chip_gen: v6e
topology: v6e:2x2x1
jax: 0.10.0
libtpu: 0.0.40
codegen_flags: <defaults>
</compile_context>

<pallas_src>
import jax
import jax.numpy as jnp
from jax.experimental import pallas as pl
from jax.experimental.pallas import tpu as pltpu


# ----------------------------- kernel ---------------------------------------

def _fcn_decoder_kernel(x_ref, w1_ref, shift_ref, w2_ref, b2_ref, o_ref):
    # x_ref:     (1, C, TP)    bf16  tile of pixels (lane axis = pixels)
    # w1_ref:    (C4, C)       bf16  conv1 weight with BN scale folded in (resident)
    # shift_ref: (C4, 1)       f32   BN shift = beta - mean * scale
    # w2_ref:    (NCLS, C4)    bf16  cls 1x1 conv weight (resident)
    # b2_ref:    (NCLS, 1)     f32   cls bias
    # o_ref:     (1, NCLS, TP) f32
    x = x_ref[0].astype(jnp.bfloat16)                                # no-op if already bf16
    h = jnp.dot(w1_ref[...], x, preferred_element_type=jnp.float32)  # (C4, TP) fp32 acc
    h = jnp.maximum(h + shift_ref[...], 0.0)                         # BN shift + ReLU
    out = jnp.dot(w2_ref[...], h.astype(jnp.bfloat16),
                  preferred_element_type=jnp.float32) + b2_ref[...]  # (NCLS, TP)
    o_ref[0] = out.astype(o_ref.dtype)


# ----------------------------- tiling helper ---------------------------------

_VMEM_TILE_BUDGET = 20 * 1024 * 1024  # keep well under the 32 MiB scoped limit


def _pick_spatial_tile(HW, C, C4, NCLS, tp_max):
    """Largest lane tile (multiple of 128, <= HW, <= tp_max) fitting the VMEM budget."""
    weight_bytes = 2 * (C4 * C * 2 + NCLS * C4 * 2 + (C4 + NCLS) * 4)
    budget = max(_VMEM_TILE_BUDGET - weight_bytes, 2 * 1024 * 1024)
    if HW <= 128:
        return HW                      # full-dim block (allowed even if not 128-aligned)
    tp = min(tp_max, HW)
    tp = max(128, (tp // 128) * 128)   # multiple of 128

    def tile_bytes(t):
        # double-buffered bf16 x tile + double-buffered f32 out tile
        return 2 * (C * t * 2) + 2 * (NCLS * t * 4)

    while tp > 128 and tile_bytes(tp) > budget:
        tp -= 128
    return tp


# ----------------------------- pallas wrapper --------------------------------

def fcn_decoder_pallas(x3, w1, shift, w2, b2, *, tp_max=1024):
    """x3: (N, C, HW) bf16 pixels; returns (N, NCLS, HW) float32."""
    N, C, HW = x3.shape
    C4 = w1.shape[0]
    NCLS = w2.shape[0]
    tp = _pick_spatial_tile(HW, C, C4, NCLS, tp_max)
    grid = (N, pl.cdiv(HW, tp))        # partial last spatial tile handled by Pallas

    flops = 2 * N * HW * C * C4 + 2 * N * HW * C4 * NCLS
    bytes_accessed = (x3.size * x3.dtype.itemsize        # input read
                      + N * NCLS * HW * 4                # output write
                      + w1.size * 2 + w2.size * 2
                      + (shift.size + b2.size) * 4)

    return pl.pallas_call(
        _fcn_decoder_kernel,
        out_shape=jax.ShapeDtypeStruct((N, NCLS, HW), jnp.float32),
        grid_spec=pltpu.PrefetchScalarGridSpec(
            num_scalar_prefetch=0,
            grid=grid,
            in_specs=[
                pl.BlockSpec((1, C, tp), lambda n, j: (n, 0, j)),   # x tile
                pl.BlockSpec((C4, C), lambda n, j: (0, 0)),         # w1 (resident)
                pl.BlockSpec((C4, 1), lambda n, j: (0, 0)),         # BN shift
                pl.BlockSpec((NCLS, C4), lambda n, j: (0, 0)),      # w2 (resident)
                pl.BlockSpec((NCLS, 1), lambda n, j: (0, 0)),       # b2
            ],
            out_specs=pl.BlockSpec((1, NCLS, tp), lambda n, j: (n, 0, j)),
        ),
        compiler_params=pltpu.CompilerParams(
            dimension_semantics=("parallel", "parallel"),
            vmem_limit_bytes=32 * 1024 * 1024,   # <= physical VMEM on v5e/v6e/v7x
        ),
        cost_estimate=pl.CostEstimate(
            flops=int(flops), transcendentals=0, bytes_accessed=int(bytes_accessed)),
    )(x3, w1, shift, w2, b2)


# ----------------------------- module-level forward ---------------------------

def _prepare_kernel_params(params):
    """Fold BN scale into conv1 weight, cast weights to bf16, biases stay fp32."""
    w1 = params["w1"].astype(jnp.float32)                       # (C4, C)
    scale = params["bn_scale"].reshape(-1, 1).astype(jnp.float32)
    shift = params["bn_shift"].reshape(-1, 1).astype(jnp.float32)
    w1_folded = (w1 * scale).astype(jnp.bfloat16)               # BN scale folded
    w2 = params["w2"].astype(jnp.bfloat16)                      # (NCLS, C4)
    b2 = params["b2"].reshape(-1, 1).astype(jnp.float32)        # (NCLS, 1)
    return w1_folded, shift, w2, b2


def fcn_decoder_forward(features, params, *, tp_max=1024):
    """features: list of NCHW feature maps (uses features[-1]); params: dict."""
    x = features[-1]                                 # (N, C, H, W) NCHW
    N, C, H, W = x.shape
    # identity attention (attention_name=None)
    w1, shift, w2, b2 = _prepare_kernel_params(params)
    NCLS = w2.shape[0]
    # Pure reshape (no transpose): channels stay on sublanes, pixels on lanes.
    # bf16 cast halves the kernel's HBM read; in a real pipeline the producer
    # already emits bf16 (or the cast fuses into it).
    x3 = x.reshape(N, C, H * W).astype(jnp.bfloat16)
    out3 = fcn_decoder_pallas(x3, w1, shift, w2, b2, tp_max=tp_max)
    return out3.reshape(N, NCLS, H, W)               # already NCHW


# ----------------------------- reference & params -----------------------------

def _reference_forward(features, params):
    x = features[-1].astype(jnp.float32)
    N, C, H, W = x.shape
    xf = x.reshape(N, C, H * W)
    h = jnp.einsum("oc,ncp->nop", params["w1"], xf)
    h = h * params["bn_scale"].reshape(1, -1, 1) + params["bn_shift"].reshape(1, -1, 1)
    h = jnp.maximum(h, 0.0)
    o = jnp.einsum("oc,ncp->nop", params["w2"], h) + params["b2"].reshape(1, -1, 1)
    return o.reshape(N, -1, H, W)


def make_params(key, in_channels, num_classes):
    C = in_channels
    C4 = C // 4
    k = jax.random.split(key, 6)
    eps = 1e-5
    # Conv2dReLU: 1x1 conv weight (C4, C, 1, 1) -> (C4, C), no bias (use_batchnorm=True)
    w1 = jax.random.normal(k[0], (C4, C), jnp.float32) * 0.1
    # synthetic BatchNorm2d (eval) statistics / affine params
    gamma = 1.0 + 0.1 * jax.random.normal(k[1], (C4,), jnp.float32)
    beta = 0.1 * jax.random.normal(k[2], (C4,), jnp.float32)
    running_mean = 0.05 * jax.random.normal(k[3], (C4,), jnp.float32)
    running_var = 1.0 + 0.1 * jnp.abs(jax.random.normal(k[4], (C4,), jnp.float32))
    bn_scale = gamma / jnp.sqrt(running_var + eps)
    bn_shift = beta - running_mean * bn_scale
    # cls: 1x1 conv weight (NCLS, C4, 1, 1) -> (NCLS, C4), with bias
    w2 = jax.random.normal(k[5], (num_classes, C4), jnp.float32) * 0.1
    b2 = jnp.linspace(-0.1, 0.1, num_classes, dtype=jnp.float32)
    return {"w1": w1, "bn_scale": bn_scale, "bn_shift": bn_shift, "w2": w2, "b2": b2}


if __name__ == "__main__":
    key = jax.random.PRNGKey(0)
    kx, kp = jax.random.split(key)

    N, C, H, W = 2, 32, 16, 16        # in_channels=32 -> hidden C//4 = 8
    num_classes = 5

    # FCNDecoder.forward takes a list of feature maps and uses x[-1]
    shallow_feat = jax.random.normal(jax.random.fold_in(kx, 1),
                                     (N, C // 2, 2 * H, 2 * W), jnp.float32)
    deep_feat = jax.random.normal(kx, (N, C, H, W), jnp.float32)
    features = [shallow_feat, deep_feat]

    params = make_params(kp, C, num_classes)

    out = jax.block_until_ready(fcn_decoder_forward(features, params))
    ref = _reference_forward(features, params)
    assert out.shape == (N, num_classes, H, W), out.shape
    assert jnp.allclose(out, ref, atol=5e-2, rtol=5e-2), \
        f"mismatch: max abs diff {float(jnp.max(jnp.abs(out - ref)))}"

    # Second shape exercising the cdiv grid / partial last spatial tile path
    # (H*W = 144 is not a multiple of the 128-lane tile).
    deep2 = jax.random.normal(jax.random.fold_in(kx, 2), (N, C, 12, 12), jnp.float32)
    out2 = jax.block_until_ready(fcn_decoder_forward([deep2], params))
    ref2 = _reference_forward([deep2], params)
    assert out2.shape == (N, num_classes, 12, 12), out2.shape
    assert jnp.allclose(out2, ref2, atol=5e-2, rtol=5e-2), \
        f"mismatch (partial tile): max abs diff {float(jnp.max(jnp.abs(out2 - ref2)))}"

    print("KERNEL_OK")
</pallas_src>

<mosaic_0001>
module attributes {stable_mosaic.version = 11 : i64} {
  func.func @_fcn_decoder_kernel(%arg0: i32, %arg1: i32, %arg2: memref<1x32x256xbf16, #tpu.memory_space<vmem>>, %arg3: memref<8x32xbf16, #tpu.memory_space<vmem>>, %arg4: memref<8x1xf32, #tpu.memory_space<vmem>>, %arg5: memref<5x8xbf16, #tpu.memory_space<vmem>>, %arg6: memref<5x1xf32, #tpu.memory_space<vmem>>, %arg7: memref<1x5x256xf32, #tpu.memory_space<vmem>>) attributes {dimension_semantics = [#tpu.dimension_semantics<parallel>, #tpu.dimension_semantics<parallel>], iteration_bounds = array<i64: 2, 1>, scalar_prefetch = 0 : i64, scratch_operands = 0 : i64, tpu.core_type = #tpu.core_type<tc>, window_params = [{transform_indices = @transform_0, window_bounds = array<i64: 1, 32, 256>}, {pipeline_mode = #tpu.pipeline_mode<synchronous>, transform_indices = @transform_1, window_bounds = array<i64: 8, 32>}, {pipeline_mode = #tpu.pipeline_mode<synchronous>, transform_indices = @transform_2, window_bounds = array<i64: 8, 1>}, {pipeline_mode = #tpu.pipeline_mode<synchronous>, transform_indices = @transform_3, window_bounds = array<i64: 5, 8>}, {pipeline_mode = #tpu.pipeline_mode<synchronous>, transform_indices = @transform_4, window_bounds = array<i64: 5, 1>}, {transform_indices = @transform_5, window_bounds = array<i64: 1, 5, 256>}]} {
    %c0 = arith.constant 0 : index
    %c0_0 = arith.constant 0 : index
    %c0_1 = arith.constant 0 : index
    %0 = vector.load %arg2[%c0, %c0_0, %c0_1] : memref<1x32x256xbf16, #tpu.memory_space<vmem>>, vector<1x32x256xbf16>
    %1 = vector.shape_cast %0 : vector<1x32x256xbf16> to vector<32x256xbf16>
    %c0_2 = arith.constant 0 : index
    %c0_3 = arith.constant 0 : index
    %2 = vector.load %arg3[%c0_2, %c0_3] : memref<8x32xbf16, #tpu.memory_space<vmem>>, vector<8x32xbf16>
    %cst = arith.constant dense<0.000000e+00> : vector<8x256xf32>
    %3 = tpu.matmul %2, %1, %cst {dimension_numbers = #tpu.dot_dimension_numbers<[1], [0], [0], [1], [0, 0, 1, 1], [], []>} : vector<8x32xbf16>, vector<32x256xbf16>, vector<8x256xf32> -> vector<8x256xf32>
    %c0_4 = arith.constant 0 : index
    %c0_5 = arith.constant 0 : index
    %4 = vector.load %arg4[%c0_4, %c0_5] : memref<8x1xf32, #tpu.memory_space<vmem>>, vector<8x1xf32>
    %5 = vector.broadcast %4 : vector<8x1xf32> to vector<8x256xf32>
    %6 = arith.addf %3, %5 : vector<8x256xf32>
    %cst_6 = arith.constant 0.000000e+00 : f32
    %7 = vector.broadcast %cst_6 : f32 to vector<8x256xf32>
    %8 = arith.maximumf %6, %7 : vector<8x256xf32>
    %c0_7 = arith.constant 0 : index
    %c0_8 = arith.constant 0 : index
    %9 = vector.load %arg5[%c0_7, %c0_8] : memref<5x8xbf16, #tpu.memory_space<vmem>>, vector<5x8xbf16>
    %10 = arith.truncf %8 : vector<8x256xf32> to vector<8x256xbf16>
    %cst_9 = arith.constant dense<0.000000e+00> : vector<5x256xf32>
    %11 = tpu.matmul %9, %10, %cst_9 {dimension_numbers = #tpu.dot_dimension_numbers<[1], [0], [0], [1], [0, 0, 1, 1], [], []>} : vector<5x8xbf16>, vector<8x256xbf16>, vector<5x256xf32> -> vector<5x256xf32>
    %c0_10 = arith.constant 0 : index
    %c0_11 = arith.constant 0 : index
    %12 = vector.load %arg6[%c0_10, %c0_11] : memref<5x1xf32, #tpu.memory_space<vmem>>, vector<5x1xf32>
    %13 = vector.broadcast %12 : vector<5x1xf32> to vector<5x256xf32>
    %14 = arith.addf %11, %13 : vector<5x256xf32>
    %c0_12 = arith.constant 0 : index
    %c0_13 = arith.constant 0 : index
    %c0_14 = arith.constant 0 : index
    %15 = vector.load %arg7[%c0_12, %c0_13, %c0_14] : memref<1x5x256xf32, #tpu.memory_space<vmem>>, vector<1x5x256xf32>
    %16 = vector.shape_cast %15 : vector<1x5x256xf32> to vector<5x256xf32>
    %17 = vector.shape_cast %14 : vector<5x256xf32> to vector<1x5x256xf32>
    tpu.vector_store %arg7[%c0_12, %c0_13, %c0_14], %17 {strides = array<i32>} : memref<1x5x256xf32, #tpu.memory_space<vmem>>, vector<1x5x256xf32>,
    return
  }
  func.func @transform_0(%arg0: i32, %arg1: i32) -> (i32, i32, i32) {
    %c0_i32 = arith.constant 0 : i32
    %c0_i32_0 = arith.constant 0 : i32
    return %arg0, %c0_i32, %arg1 : i32, i32, i32
  }
  func.func @transform_1(%arg0: i32, %arg1: i32) -> (i32, i32) {
    %c0_i32 = arith.constant 0 : i32
    %c0_i32_0 = arith.constant 0 : i32
    %c0_i32_1 = arith.constant 0 : i32
    return %c0_i32, %c0_i32_0 : i32, i32
  }
  func.func @transform_2(%arg0: i32, %arg1: i32) -> (i32, i32) {
    %c0_i32 = arith.constant 0 : i32
    %c0_i32_0 = arith.constant 0 : i32
    %c0_i32_1 = arith.constant 0 : i32
    return %c0_i32, %c0_i32_0 : i32, i32
  }
  func.func @transform_3(%arg0: i32, %arg1: i32) -> (i32, i32) {
    %c0_i32 = arith.constant 0 : i32
    %c0_i32_0 = arith.constant 0 : i32
    %c0_i32_1 = arith.constant 0 : i32
    return %c0_i32, %c0_i32_0 : i32, i32
  }
  func.func @transform_4(%arg0: i32, %arg1: i32) -> (i32, i32) {
    %c0_i32 = arith.constant 0 : i32
    %c0_i32_0 = arith.constant 0 : i32
    %c0_i32_1 = arith.constant 0 : i32
    return %c0_i32, %c0_i32_0 : i32, i32
  }
  func.func @transform_5(%arg0: i32, %arg1: i32) -> (i32, i32, i32) {
    %c0_i32 = arith.constant 0 : i32
    %c0_i32_0 = arith.constant 0 : i32
    return %arg0, %c0_i32, %arg1 : i32, i32, i32
  }
}

</mosaic_0001>

<bundles_post_ra>
// kernel: tpu_custom_call.1
= control target key start
LH: loop header
LB: loop body
LE: loop exit
PB: predicated region body
PF: predicated region fallthrough
CT: control target
= control target key end

     0   :  { %10 = vsyncpa [#allocation3], 0  ;;  %s819_s0 = inlined_call_operand.hbm [shape: bf16[2,32,256], index: 0, kind: input, shape index: {}]   ;;  %s820_s1 = inlined_call_operand.vmem [shape: bf16[8,32], index: 1, kind: input, shape index: {}]   ;;  %s821_s2 = inlined_call_operand.vmem [shape: f32[8,1], index: 2, kind: input, shape index: {}]   ;;  %s822_s3 = inlined_call_operand.vmem [shape: bf16[5,8], index: 3, kind: input, shape index: {}]   ;;  %s823_s4 = inlined_call_operand.vmem [shape: f32[5,1], index: 4, kind: input, shape index: {}]   ;;  %s824_s5 = inlined_call_operand.vmem [shape: f32[2,5,256], index: 5, kind: output, shape index: {}]  }
   0x1   :  { %12 = vsyncpa [#allocation3 + $0x1], 0  ;;  %s711_s18 = smov 0   ;;  %s713_s19 = smov 0  }
   0x2   :  { %s715_s20 = smov 0   ;;  %s717_s21 = smov 0  }
   0x3   :  { %s719_s22 = smov 0   ;;  %s721_s23 = smov 0  }
   0x4 LB: > { %s510_s24 = sadd.s32 4294967295, %s675_s23   ;;  %s30_s25 = sadd.s32 1, %s671_s22  ;;  %s675_s23 = sphi %s721_s23, %s18_s23   ;;  %s671_s22 = sphi %s719_s22, %s832_s22   ;;  %s667_s21 = sphi %s717_s21, %s831_s21   ;;  %s663_s20 = sphi %s715_s20, %s830_s20   ;;  %s659_s19 = sphi %s713_s19, %s829_s19   ;;  %s655_s18 = sphi %s711_s18, %s828_s18  }
   0x5   : > { %p32_p0 = scmp.ge.s32.totalorder %s30_s25, 2  ;;  %s39_s26 = sadd.s32 1, %s663_s20 }
   0x6   : > { %p46_p1 = scmp.ne.s32.totalorder %s663_s20, %s659_s19  ;;  %p47_p2 = scmp.eq.s32.totalorder %s675_s23, 0 }
   0x7   : > { %s834_s25 = smov (%p32_p0, %s30_s25), 0  ;;  %p52_p4 = scmp.ne.s32.totalorder %s659_s19, %s655_s18 }
   0x8   : > { %p747_p3 = por %p47_p2, %p46_p1  ;;  %s34_s28 = ssub.s32 %s671_s22, %s834_s25 }
   0x9   : > { %p53_p5 = scmp.eq.s32.totalorder %s510_s24, 0  ;;  %p37_p6 = scmp.eq.s32.totalorder %s34_s28, 0 }
   0xa   : > { %p538_p8 = scmp.lt.s32.totalorder %s675_s23, 2  ;;  %s200_s6 = sand.u32 1, %s663_s20  }
   0xb   : > { %p754_p7 = por %p53_p5, %p52_p4  ;;  %s530_s7 = sshll.u32 %s671_s22, 9 }
   0xc   : > { %s760_s30 = scalar_select %p37_p6, %s663_s20, %s39_s26  }
   0xd   : > { %s514_s8 = sshll.u32 %s200_s6, 5  ;;  %s212_s11 = scalar_lea.hbm %s819_s0, %s530_s7 }
   0xe   : > { %s204_s12 = scalar_lea.vmem [#allocation2], %s514_s8  ;;  %p769_p9 = pnand %p538_p8, %p747_p3 }
   0xf   : > { %s213_s13 = sshll.u32 %s204_s12, 4  ;;  %s201_s15 = scalar_lea.sflag [#allocation3], %s200_s6  ;;  %s214_s13 = int_to_ptr.vmem [resolvable:$true] %s213_s13 }
  0x10   : > { %p599_p10 = pneg %p769_p9  ;;  %s610_s16 = scalar_lea.vmem %s214_s13, 512 }
  0x11   : > { %p611_p11 = scmp.ne.s32.totalorder %s214_s13, %s610_s16  ;;  %s677_s17 = smov [#allocation2]  }
  0x12   : > { %s615_s18 = sshll.u32 %s677_s17, 4  ;;  %s616_s18 = int_to_ptr.vmem [resolvable:$false] %s615_s18 }
  0x13   : > { %p613_p12 = pnand %p611_p11, %p599_p10  ;;  %s617_s24 = scalar_lea.vmem %s616_s18, 1024 }
  0x14   : > { %p618_p0 = scmp.lt.s32.totalorder %s214_s13, %s616_s18  ;;  %p619_p1 = scmp.lt.s32.totalorder %s617_s24, %s610_s16 }
  0x15   : > { %p614_p13 = pneg %p613_p12 }
  0x16   : > { %p620_p2 = por %p619_p1, %p618_p0 }
  0x18   : > { %p621_p3 = pnand %p620_p2, %p614_p13 }
  0x1a   : > { %624 = shalt.err (!%p621_p3)
}
  0x1b   : > { %s678_s26 = smov 128   ;;  %s679_s27 = smov 8  }
  0x1c   : > { %537 = dma.hbm_to_vmem [thread:$0]  (!%p769_p9), %s212_s11, 512, %s214_s13, %s201_s15, %s678_s26, %s678_s26, %s679_s27  }
  0x1d   : > { %p517_p4 = scmp.ge.s32.totalorder %s675_s23, 1  ;;  %p221_p5 = scmp.lt.s32.totalorder %s675_s23, 3 }
  0x1f   : > { %p222_p6 = pnand %p517_p4, %p221_p5 }
  0x20   : > { %s227_s28 = sand.u32 (!%p222_p6), 1, %s659_s19  }
  0x21   : > { %225 = sbr.rel (%p222_p6) target bundleno = 453 (0x1c5), region = 40  ;;  %s518_s6 = sshll.u32 (!%p222_p6), %s227_s28, 5 }
  0x22   : > { %s228_s7 = scalar_lea.sflag (!%p222_p6), [#allocation3], %s227_s28  ;;  %s231_s8 = scalar_lea.vmem (!%p222_p6), [#allocation2], %s518_s6 }
  0x26   : > { %650 = dma.done.wait (%p754_p7), %s228_s7, 512  }
  0x27   : > { %652 = vsyncadd (%p754_p7), %s228_s7, 4294966784  ;;  %v680_v0 = vmov 0   ;;  %v591_v1 = vld [vmem:[%s231_s8 + $0x14] ss:$8 sps:$4 sm:$0xff]   ;;  %v593_v2 = vld [vmem:[%s231_s8 + $0x10] ss:$8 sps:$4 sm:$0xff]  }
  0x28   : > { %341 = vmatprep.mubr.bf16.mxu0 %v680_v0  ;;  %590 = vset.pattern.permute.xlu0 %v680_v0  ;;  %v594_v3 = vld [vmem:[%s231_s8 + $0x4] ss:$8 sps:$4 sm:$0xff]   ;;  %v596_v4 = vld [vmem:[%s231_s8] ss:$8 sps:$4 sm:$0xff]   ;;  %vm305_vm0 = vcmask 261120   ;;  %vm365_vm1 = vcmask 1043456  }
  0x29   : > { %404 = vmatprep.mubr.bf16.mxu1 %v680_v0  ;;  %321 = vmatprep.subr.bf16.mxu0 %v591_v1  ;;  %v279_v5 = vld [vmem:[%s821_s2] sm:$0xff]  ;;  %vm361_vm2 = vcmask 64512   ;;  %p264_p7 = scmp.lt.s32.totalorder %s667_s21, 1 }
  0x2a   : > { %322 = vmatpush1.bf16.msra.mxu0 %v593_v2  ;;  %282 = vperm.xlu0 %590, %v279_v5   ;;  %v355_v6 = vld [vmem:[%s823_s4] sm:$0x1f] }
  0x2b   : > { %323 = vmatprep.subr.bf16.mxu0 %v594_v3  ;;  %v278_v7 = vld [vmem:[%s820_s1] sm:$0xf]  ;;  %s836_s21 = smov (!%p264_p7, %s667_s21), 1 }
  0x2c   : > { %v352_v20 = vld [vmem:[%s822_s3] sm:$0x7]  ;;  %s531_s16 = sshll.u32 %s836_s21, 4 }
  0x2d   : > { %s271_s24 = scalar_lea.vmem %s824_s5, %s531_s16 }
  0x2e   : > { %324 = vmatpush1.bf16.msra.mxu0 %v596_v4  ;;  %358 = vperm.xlu0 %590, %v355_v6  }
  0x31   : > { %525 = vmatmul.mubr.msk.bf16.vlgmr.msra.gmra.mxu0 %vm305_vm0, %v278_v7 }
  0xa5   : > { %v283_v8 = vpop.permute.xlu0 %282 }
  0xa9   : > { %v359_v21 = vpop.permute.xlu0 %358 }
  0xf1   : > { %v343_v9 = vpop.f32.mrf.mxu0 }
  0xf2   : > { %v344_v10 = vadd.f32 %v343_v9, %v283_v8 }
  0xf3   : > { %v345_v11 = vpop.f32.mrf.mxu0 }
  0xf4   : > { %v350_v12 = vmax.f32 %v344_v10, 0.0  ;;  %v346_v13 = vadd.f32 %v345_v11, %v283_v8 }
  0xf5   : > { %v347_v14 = vpop.f32.mrf.mxu0 }
  0xf6   : > { %v353_v15 = vpack.c.bf16 %v350_v12, %v350_v12  ;;  %v351_v16 = vmax.f32 %v346_v13, 0.0 }
  0xf7   : > { %v348_v17 = vpop.f32.mrf.mxu0 }
  0xf8   : > { %v354_v18 = vpack.c.bf16 %v351_v16, %v351_v16  ;;  %v367_v19 = vsel %vm365_vm1, %v353_v15, 0 }
  0xfa   : > { %526 = vmatprep.subr.msk.bf16.mxu1 %vm365_vm1, %v354_v18 }
  0xfb   : > { %387 = vmatpush1.bf16.msra.mxu1 %v367_v19 }
  0xfe   : > { %527 = vmatmul.mubr.msk.bf16.vlgmr.msra.gmra.mxu1 %vm361_vm2, %v352_v20 }
 0x1be   : > { %v406_v22 = vpop.f32.mrf.mxu1 }
 0x1bf   : > { %v407_v23 = vadd.f32 %v406_v22, %v359_v21 }
 0x1c0   : > { %v408_v24 = vpop.f32.mrf.mxu1 }
 0x1c1   : > { %413 = vst [vmem:[%s271_s24] sm:$0x1f] %v407_v23  ;;  %v409_v25 = vadd.f32 %v408_v24, %v359_v21 }
 0x1c2   : > { %v410_v26 = vpop.f32.mrf.mxu1 }
 0x1c3   : > { %414 = vst [vmem:[%s271_s24 + $0x8] sm:$0x1f] %v409_v25 }
 0x1c4   : > { %v411_v27 = vpop.f32.mrf.mxu1 }
 0x1c5 PF: > { %s18_s23 = sadd.s32 1, %s675_s23   ;;  %s828_s18 = smov %s659_s19 }
 0x1c6   : > { %p15_p8 = scmp.ge.s32.totalorder %s18_s23, 4   ;;  %s829_s19 = smov %s663_s20 }
 0x1c7   : > { %s830_s20 = smov %s760_s30  ;;  %s831_s21 = smov %s671_s22 }
 0x1c8   : > { %s832_s22 = smov %s834_s25  ;;  %17 = sbr.rel (!%p15_p8) target bundleno = 4 (0x4), region = 80 }
 0x1cd   :  { %445 = vsyncpa [#allocation3], 1 }
 0x1ce   :  { %447 = vsyncpa [#allocation3 + $0x1], 1 }

</bundles_post_ra>
